<compile_context>
chip_gen: v5e
topology: v5e:2x2
jax: 0.10.0
libtpu: 0.0.40
codegen_flags: <defaults>
</compile_context>

<pallas_src>
import jax
import jax.numpy as jnp
from jax.experimental import pallas as pl
from jax.experimental.pallas import tpu as pltpu

OBS_LEN = 8            # config.obs_len
PRED_LEN = 12          # config.pred_len
NIN = 2                # traj_lstm_input_size
HID = 16               # traj_lstm_hidden_size
NMADE = 4              # number of MADE blocks in the flow

R_PACK = 24            # packed input rows: 16 traj + 2 noise + 2 obs_last + 4 zero pad (8-align)
VEC_COLS = 1 + 4 * NMADE   # [b_enc | bj_k | b1_k | joiner col_k | b2-derived constants_k]


# ------------------------------ Pallas kernel -------------------------------
def _goal_kernel(x_ref, w_enc_ref, wc_ref, vec_ref, w1_ref, w2_ref, out_ref):
    # x_ref: (24, BT)  rows 0-15 flattened obs traj, 16-17 noise, 18-19 obs_traj_pos[-1]
    traj = x_ref[0:2 * OBS_LEN, :]                                     # (16, BT)

    # encoder: ReLU(spectral_norm(Linear)(traj)); Dropout(p=0.1) is identity at inference.
    cond = jnp.dot(w_enc_ref[...], traj, preferred_element_type=jnp.float32)
    cond = jnp.maximum(cond + vec_ref[:, 0:1], 0.0)                    # (16, BT)

    # cond projection for all 4 MADE blocks in one MXU call (off the serial flow chain);
    # per-block slice + bias add happens inside the loop (keeps vreg pressure low).
    ch_all = jnp.dot(wc_ref[...], cond, preferred_element_type=jnp.float32)   # (64, BT)

    # FlowSequential inverse: iterate reversed([MADE_k, Reverse(2)] * 4), statically unrolled.
    x0 = x_ref[2 * OBS_LEN:2 * OBS_LEN + 1, :]                         # noise x  (1, BT)
    x1 = x_ref[2 * OBS_LEN + 1:2 * OBS_LEN + 2, :]                     # noise y  (1, BT)
    for k in (3, 2, 1, 0):
        u0, u1 = x1, x0                                                # fnn.Reverse(2) inverse
        c = vec_ref[0:4, 13 + k:14 + k]                                # (4,1): [mu0, mu1, e^a0, e^a1]
        # MADE output mask zeroes w2 rows 0/2 -> dim-0 mean / scale are pure (pre-exp'd) biases.
        x0 = u0 * c[2:3] + c[0:1]                                      # (1, BT)
        # trunk for dim 1.  Input mask zeroes the x1 joiner column and the trunk input is
        # [x0, 0], so the joiner is a rank-1 broadcast multiply on the VPU.
        h = x0 * vec_ref[:, 9 + k:10 + k] \
            + (ch_all[k * HID:(k + 1) * HID, :] + vec_ref[:, 1 + k:2 + k])
        h = jnp.maximum(h, 0.0)                                        # (16, BT)
        h = jnp.maximum(jnp.dot(w1_ref[k], h, preferred_element_type=jnp.float32)
                        + vec_ref[:, 5 + k:6 + k], 0.0)                # (16, BT)
        t = jnp.dot(w2_ref[k], h, preferred_element_type=jnp.float32)  # (2, BT) = [mu1, a1] - b2
        x1 = u1 * (jnp.exp(t[1:2, :]) * c[3:4]) + (t[0:1, :] + c[1:2])

    last = x_ref[2 * OBS_LEN + NIN:2 * OBS_LEN + 2 * NIN, :]           # obs_traj_pos[-1] (2, BT)
    out_ref[...] = jnp.concatenate([x0, x1], axis=0) + last            # lane-dense (2, BT) store


# --------------------------------- wrapper ----------------------------------
def _cdiv(a, b):
    return -(-a // b)


def _round_up(x, m):
    return _cdiv(x, m) * m


def _num_tensorcores():
    # v7x has 2 TensorCores per chip; v5e/v6e have 1.  Pure host-side query, best effort.
    try:
        kind = jax.devices()[0].device_kind.lower()
        if "v7" in kind or "7x" in kind:
            return 2
    except Exception:
        pass
    return 1


def check_folded_masks(params):
    """Debug check of the out-of-band contract: MADE masks must be folded into wj / w2."""
    _, _, wj, _, _, _, _, w2, _ = params
    ok = bool(jnp.all(wj[:, :, 1] == 0.0)) and bool(jnp.all(w2[:, 0::2, :] == 0.0))
    if not ok:
        raise ValueError("MADE masks not folded in: need wj[:,:,1] == 0 and w2 rows 0,2 == 0")


def goal_generator_forward(traj_rel, obs_traj_pos, noise, params, *,
                           grid_steps=None, max_block_batch=4096):
    """GoalGenerator forward, 'test' mode: maf.sample(cond, noise) + obs_traj_pos[-1]."""
    B = traj_rel.shape[1]

    # Grid sizing: latency/overhead bound kernel -> as few, as large, and (on v7x) as balanced
    # grid steps as possible.  BT must be a multiple of 128 (batch lives on the lane axis).
    if grid_steps is None:
        cores = _num_tensorcores()
        steps = max(cores, _cdiv(B, max_block_batch))
        steps = _round_up(steps, cores)                 # balanced across TensorCores
    else:
        steps = max(1, int(grid_steps))
    steps = min(steps, max(1, _cdiv(B, 128)))           # never emit all-padding grid steps
    Bp = _round_up(B, 128 * steps)
    BT = Bp // steps

    # ---- one packed, lane-major per-agent operand: (24, Bp) ----------------
    # row t*2+c  <->  traj_rel[t, agent, c]  (matches permute(1,0,2).reshape(-1, 2*obs_len))
    traj_T = jnp.transpose(traj_rel[:OBS_LEN], (0, 2, 1)).reshape(2 * OBS_LEN, B)
    x_pack = jnp.concatenate(
        [traj_T.astype(jnp.float32),
         noise.T.astype(jnp.float32),
         obs_traj_pos[-1].T.astype(jnp.float32),
         jnp.zeros((R_PACK - (2 * OBS_LEN + 2 * NIN), B), jnp.float32)], axis=0)
    x_pack = jnp.pad(x_pack, ((0, 0), (0, Bp - B)))                     # (24, Bp)

    # ---- static weight repacking (torch (out,in) layout, masks already folded) ----
    w_enc, b_enc, wj, bj, wc, w1, b1, w2, b2 = params
    wc_pack = wc.reshape(NMADE * HID, HID)                              # (64, 16)
    w2_live = w2[:, 1::2, :]                                            # live rows 1,3 -> (4,2,16)
    # b2-derived per-block constants, log-scales pre-exponentiated (off the EUP/serial chain):
    # column k, rows 0..3 = [mu0, mu1, exp(a0), exp(a1)]
    b2c = jnp.stack([b2[:, 0], b2[:, 1], jnp.exp(b2[:, 2]), jnp.exp(b2[:, 3])], axis=0)  # (4,4)
    b2c = jnp.pad(b2c, ((0, HID - 4), (0, 0)))                          # (16, 4)
    vec_pack = jnp.concatenate(
        [b_enc.reshape(HID, 1), bj.T, b1.T, wj[:, :, 0].T, b2c], axis=1).astype(jnp.float32)
    # vec_pack: (16, 17) = [b_enc | bj_0..3 | b1_0..3 | joiner col_0..3 | b2 consts_0..3]

    row_blk = lambda i: (0, i)
    full2 = lambda i: (0, 0)
    full3 = lambda i: (0, 0, 0)

    out = pl.pallas_call(
        _goal_kernel,
        out_shape=jax.ShapeDtypeStruct((NIN, Bp), jnp.float32),
        grid_spec=pltpu.PrefetchScalarGridSpec(
            num_scalar_prefetch=0,
            grid=(steps,),
            in_specs=[
                pl.BlockSpec((R_PACK, BT), row_blk),                 # packed per-agent inputs
                pl.BlockSpec((HID, 2 * OBS_LEN), full2),             # encoder W (out,in)
                pl.BlockSpec((NMADE * HID, HID), full2),             # MADE cond W, stacked
                pl.BlockSpec((HID, VEC_COLS), full2),                # packed vectors/constants
                pl.BlockSpec((NMADE, HID, HID), full3),              # MADE trunk W1 (masked)
                pl.BlockSpec((NMADE, NIN, HID), full3),              # MADE trunk W2 live rows
            ],
            out_specs=pl.BlockSpec((NIN, BT), row_blk),
        ),
        compiler_params=pltpu.CompilerParams(dimension_semantics=("parallel",)),
    )(x_pack, w_enc, wc_pack, vec_pack, w1, w2_live)
    return out[:, :B].T                                              # (B, 2)


# ----------------------- deterministic parameter setup ----------------------
def _get_mask(in_f, out_f, n_flow, mask_type=None):
    # fnn.get_mask semantics; returns (out_f, in_f) to match torch Linear weight layout.
    if mask_type == 'input':
        in_deg = jnp.arange(in_f) % n_flow
    else:
        in_deg = jnp.arange(in_f) % (n_flow - 1)
    if mask_type == 'output':
        out_deg = jnp.arange(out_f) % n_flow - 1
    else:
        out_deg = jnp.arange(out_f) % (n_flow - 1)
    return (out_deg[:, None] >= in_deg[None, :]).astype(jnp.float32)


def _spectral_normalize(w, n_iter=30):
    # power-iteration spectral norm (mimics torch spectral_norm at inference)
    v = jnp.full((w.shape[1],), 1.0 / jnp.sqrt(w.shape[1]), w.dtype)
    u = jnp.zeros((w.shape[0],), w.dtype)
    for _ in range(n_iter):
        u = w @ v
        u = u / (jnp.linalg.norm(u) + 1e-12)
        v = w.T @ u
        v = v / (jnp.linalg.norm(v) + 1e-12)
    sigma = u @ (w @ v)
    return w / sigma


def make_params(key):
    k_enc, k_benc, k_bias, k_blocks = jax.random.split(key, 4)
    # inputLayer_encoder: spectral_norm(Linear(2*obs_len, 16)); bias nonzero (torch default init)
    w_enc = _spectral_normalize(0.2 * jax.random.normal(k_enc, (HID, 2 * OBS_LEN), jnp.float32))
    b_enc = 0.1 * jax.random.normal(k_benc, (HID,), jnp.float32)

    orth = jax.nn.initializers.orthogonal()              # nn.init.orthogonal_
    in_mask = _get_mask(NIN, HID, NIN, 'input')           # (HID, NIN)
    hid_mask = _get_mask(HID, HID, NIN)                   # (HID, HID)
    out_mask = _get_mask(HID, 2 * NIN, NIN, 'output')     # (2*NIN, HID)

    bkeys = jax.random.split(k_blocks, NMADE)
    wj, wc, w1, w2 = [], [], [], []
    for k in range(NMADE):
        k0, k1, k2, k3 = jax.random.split(bkeys[k], 4)
        wj.append(orth(k0, (HID, NIN)) * in_mask)              # masks folded into the weights
        wc.append(orth(k1, (HID, HID)))
        w1.append(orth(k2, (HID, HID)) * hid_mask)
        w2.append(orth(k3, (2 * NIN, HID)) * out_mask)
    wj = jnp.stack(wj).astype(jnp.float32)
    wc = jnp.stack(wc).astype(jnp.float32)
    w1 = jnp.stack(w1).astype(jnp.float32)
    w2 = jnp.stack(w2).astype(jnp.float32)
    kb1, kb2, kb3 = jax.random.split(k_bias, 3)
    # The torch module fills maf biases with 0; small nonzero values here exercise the full
    # bias path of the kernel (it supports arbitrary trained biases).
    bj = 0.1 * jax.random.normal(kb1, (NMADE, HID), jnp.float32)
    b1 = 0.1 * jax.random.normal(kb2, (NMADE, HID), jnp.float32)
    b2 = 0.1 * jax.random.normal(kb3, (NMADE, 2 * NIN), jnp.float32)
    return (w_enc, b_enc, wj, bj, wc, w1, b1, w2, b2)


# ------------------------- pure-JAX reference check --------------------------
def reference_forward(traj_rel, obs_traj_pos, noise, params):
    w_enc, b_enc, wj, bj, wc, w1, b1, w2, b2 = params
    B = traj_rel.shape[1]
    traj_flat = jnp.transpose(traj_rel[:OBS_LEN], (1, 0, 2)).reshape(B, 2 * OBS_LEN)
    cond = jax.nn.relu(traj_flat @ w_enc.T + b_enc)

    def trunk(xv, k, ch):
        h = jax.nn.relu(xv @ wj[k].T + bj[k] + ch)
        h = jax.nn.relu(h @ w1[k].T + b1[k])
        return h @ w2[k].T + b2[k]

    x = noise
    for k in (3, 2, 1, 0):
        x = x[:, ::-1]
        ch = cond @ wc[k].T
        t0 = trunk(jnp.zeros_like(x), k, ch)
        x0 = x[:, 0:1] * jnp.exp(t0[:, 2:3]) + t0[:, 0:1]
        t1 = trunk(jnp.concatenate([x0, jnp.zeros_like(x0)], axis=1), k, ch)
        x1 = x[:, 1:2] * jnp.exp(t1[:, 3:4]) + t1[:, 1:2]
        x = jnp.concatenate([x0, x1], axis=1)
    return x + obs_traj_pos[-1]


if __name__ == "__main__":
    key = jax.random.PRNGKey(0)
    kp, kdata = jax.random.split(key)
    params = make_params(kp)
    check_folded_masks(params)
    # TODO(synk): 'train'/'sampling' branches (log_probs / diversity loss) and Pooling_net /
    # pred_hidden2pos are not exercised by the 'test' forward path and are omitted.

    ok = True
    # small scene (grid collapses to one step), a larger batch (device-default grid),
    # and a forced 2-step grid to exercise the blocked / megacore path.
    for B, steps in ((8, None), (300, None), (300, 2)):
        k1, k2, k4, kdata = jax.random.split(kdata, 4)
        traj_rel = jax.random.normal(k1, (OBS_LEN + PRED_LEN, B, 2), jnp.float32)
        obs_traj_pos = jax.random.normal(k2, (OBS_LEN, B, 2), jnp.float32)
        # pred_traj_gt_pos is unused in 'test' mode; torch.randn noise passed explicitly.
        noise = jax.random.normal(k4, (B, 2), jnp.float32)

        out = goal_generator_forward(traj_rel, obs_traj_pos, noise, params, grid_steps=steps)
        out = jax.block_until_ready(out)

        ref = reference_forward(traj_rel, obs_traj_pos, noise, params)
        ok = ok and out.shape == (B, 2)
        ok = ok and bool(jnp.allclose(out, ref, atol=1e-4, rtol=1e-4))

    assert ok, "kernel mismatch vs JAX reference"
    print("KERNEL_OK")
</pallas_src>

<mosaic_0001>
module attributes {stable_mosaic.version = 11 : i64} {
  func.func @_goal_kernel(%arg0: i32, %arg1: memref<24x128xf32, #tpu.memory_space<vmem>>, %arg2: memref<16x16xf32, #tpu.memory_space<vmem>>, %arg3: memref<64x16xf32, #tpu.memory_space<vmem>>, %arg4: memref<16x17xf32, #tpu.memory_space<vmem>>, %arg5: memref<4x16x16xf32, #tpu.memory_space<vmem>>, %arg6: memref<4x2x16xf32, #tpu.memory_space<vmem>>, %arg7: memref<2x128xf32, #tpu.memory_space<vmem>>) attributes {dimension_semantics = [#tpu.dimension_semantics<parallel>], iteration_bounds = array<i64: 1>, scalar_prefetch = 0 : i64, scratch_operands = 0 : i64, tpu.core_type = #tpu.core_type<tc>, window_params = [{transform_indices = @transform_0, window_bounds = array<i64: 24, 128>}, {pipeline_mode = #tpu.pipeline_mode<synchronous>, transform_indices = @transform_1, window_bounds = array<i64: 16, 16>}, {pipeline_mode = #tpu.pipeline_mode<synchronous>, transform_indices = @transform_2, window_bounds = array<i64: 64, 16>}, {pipeline_mode = #tpu.pipeline_mode<synchronous>, transform_indices = @transform_3, window_bounds = array<i64: 16, 17>}, {pipeline_mode = #tpu.pipeline_mode<synchronous>, transform_indices = @transform_4, window_bounds = array<i64: 4, 16, 16>}, {pipeline_mode = #tpu.pipeline_mode<synchronous>, transform_indices = @transform_5, window_bounds = array<i64: 4, 2, 16>}, {transform_indices = @transform_6, window_bounds = array<i64: 2, 128>}]} {
    %c0 = arith.constant 0 : index
    %c0_0 = arith.constant 0 : index
    %0 = vector.load %arg1[%c0, %c0_0] : memref<24x128xf32, #tpu.memory_space<vmem>>, vector<16x128xf32>
    %c0_1 = arith.constant 0 : index
    %c0_2 = arith.constant 0 : index
    %1 = vector.load %arg2[%c0_1, %c0_2] : memref<16x16xf32, #tpu.memory_space<vmem>>, vector<16x16xf32>
    %cst = arith.constant dense<0.000000e+00> : vector<16x128xf32>
    %2 = tpu.matmul %1, %0, %cst {dimension_numbers = #tpu.dot_dimension_numbers<[1], [0], [0], [1], [0, 0, 1, 1], [], []>} : vector<16x16xf32>, vector<16x128xf32>, vector<16x128xf32> -> vector<16x128xf32>
    %c0_3 = arith.constant 0 : index
    %c0_4 = arith.constant 0 : index
    %3 = vector.load %arg4[%c0_3, %c0_4] : memref<16x17xf32, #tpu.memory_space<vmem>>, vector<16x1xf32>
    %4 = vector.broadcast %3 : vector<16x1xf32> to vector<16x128xf32>
    %5 = arith.addf %2, %4 : vector<16x128xf32>
    %cst_5 = arith.constant 0.000000e+00 : f32
    %6 = vector.broadcast %cst_5 : f32 to vector<16x128xf32>
    %7 = arith.maximumf %5, %6 : vector<16x128xf32>
    %c0_6 = arith.constant 0 : index
    %c0_7 = arith.constant 0 : index
    %8 = vector.load %arg3[%c0_6, %c0_7] : memref<64x16xf32, #tpu.memory_space<vmem>>, vector<64x16xf32>
    %cst_8 = arith.constant dense<0.000000e+00> : vector<64x128xf32>
    %9 = tpu.matmul %8, %7, %cst_8 {dimension_numbers = #tpu.dot_dimension_numbers<[1], [0], [0], [1], [0, 0, 1, 1], [], []>} : vector<64x16xf32>, vector<16x128xf32>, vector<64x128xf32> -> vector<64x128xf32>
    %c16 = arith.constant 16 : index
    %c0_9 = arith.constant 0 : index
    %10 = vector.load %arg1[%c16, %c0_9] : memref<24x128xf32, #tpu.memory_space<vmem>>, vector<1x128xf32>
    %c17 = arith.constant 17 : index
    %c0_10 = arith.constant 0 : index
    %11 = vector.load %arg1[%c17, %c0_10] : memref<24x128xf32, #tpu.memory_space<vmem>>, vector<1x128xf32>
    %c0_11 = arith.constant 0 : index
    %c16_12 = arith.constant 16 : index
    %12 = vector.load %arg4[%c0_11, %c16_12] : memref<16x17xf32, #tpu.memory_space<vmem>>, vector<4x1xf32>
    %13 = vector.extract_strided_slice %12 {offsets = [2, 0], sizes = [1, 1], strides = [1, 1]} : vector<4x1xf32> to vector<1x1xf32>
    %14 = vector.broadcast %13 : vector<1x1xf32> to vector<1x128xf32>
    %15 = arith.mulf %11, %14 : vector<1x128xf32>
    %16 = vector.extract_strided_slice %12 {offsets = [0, 0], sizes = [1, 1], strides = [1, 1]} : vector<4x1xf32> to vector<1x1xf32>
    %17 = vector.broadcast %16 : vector<1x1xf32> to vector<1x128xf32>
    %18 = arith.addf %15, %17 : vector<1x128xf32>
    %c0_13 = arith.constant 0 : index
    %c12 = arith.constant 12 : index
    %19 = vector.load %arg4[%c0_13, %c12] : memref<16x17xf32, #tpu.memory_space<vmem>>, vector<16x1xf32>
    %20 = vector.broadcast %18 : vector<1x128xf32> to vector<16x128xf32>
    %21 = vector.broadcast %19 : vector<16x1xf32> to vector<16x128xf32>
    %22 = arith.mulf %20, %21 : vector<16x128xf32>
    %23 = vector.extract_strided_slice %9 {offsets = [48, 0], sizes = [16, 128], strides = [1, 1]} : vector<64x128xf32> to vector<16x128xf32>
    %c0_14 = arith.constant 0 : index
    %c4 = arith.constant 4 : index
    %24 = vector.load %arg4[%c0_14, %c4] : memref<16x17xf32, #tpu.memory_space<vmem>>, vector<16x1xf32>
    %25 = vector.broadcast %24 : vector<16x1xf32> to vector<16x128xf32>
    %26 = arith.addf %23, %25 : vector<16x128xf32>
    %27 = arith.addf %22, %26 : vector<16x128xf32>
    %cst_15 = arith.constant 0.000000e+00 : f32
    %28 = vector.broadcast %cst_15 : f32 to vector<16x128xf32>
    %29 = arith.maximumf %27, %28 : vector<16x128xf32>
    %c3 = arith.constant 3 : index
    %c0_16 = arith.constant 0 : index
    %c0_17 = arith.constant 0 : index
    %30 = vector.load %arg5[%c3, %c0_16, %c0_17] : memref<4x16x16xf32, #tpu.memory_space<vmem>>, vector<1x16x16xf32>
    %31 = vector.shape_cast %30 : vector<1x16x16xf32> to vector<16x16xf32>
    %cst_18 = arith.constant dense<0.000000e+00> : vector<16x128xf32>
    %32 = tpu.matmul %31, %29, %cst_18 {dimension_numbers = #tpu.dot_dimension_numbers<[1], [0], [0], [1], [0, 0, 1, 1], [], []>} : vector<16x16xf32>, vector<16x128xf32>, vector<16x128xf32> -> vector<16x128xf32>
    %c0_19 = arith.constant 0 : index
    %c8 = arith.constant 8 : index
    %33 = vector.load %arg4[%c0_19, %c8] : memref<16x17xf32, #tpu.memory_space<vmem>>, vector<16x1xf32>
    %34 = vector.broadcast %33 : vector<16x1xf32> to vector<16x128xf32>
    %35 = arith.addf %32, %34 : vector<16x128xf32>
    %cst_20 = arith.constant 0.000000e+00 : f32
    %36 = vector.broadcast %cst_20 : f32 to vector<16x128xf32>
    %37 = arith.maximumf %35, %36 : vector<16x128xf32>
    %c3_21 = arith.constant 3 : index
    %c0_22 = arith.constant 0 : index
    %c0_23 = arith.constant 0 : index
    %38 = vector.load %arg6[%c3_21, %c0_22, %c0_23] : memref<4x2x16xf32, #tpu.memory_space<vmem>>, vector<1x2x16xf32>
    %39 = vector.shape_cast %38 : vector<1x2x16xf32> to vector<2x16xf32>
    %cst_24 = arith.constant dense<0.000000e+00> : vector<2x128xf32>
    %40 = tpu.matmul %39, %37, %cst_24 {dimension_numbers = #tpu.dot_dimension_numbers<[1], [0], [0], [1], [0, 0, 1, 1], [], []>} : vector<2x16xf32>, vector<16x128xf32>, vector<2x128xf32> -> vector<2x128xf32>
    %41 = vector.extract_strided_slice %40 {offsets = [1, 0], sizes = [1, 128], strides = [1, 1]} : vector<2x128xf32> to vector<1x128xf32>
    %42 = math.exp %41 : vector<1x128xf32>
    %43 = vector.extract_strided_slice %12 {offsets = [3, 0], sizes = [1, 1], strides = [1, 1]} : vector<4x1xf32> to vector<1x1xf32>
    %44 = vector.broadcast %43 : vector<1x1xf32> to vector<1x128xf32>
    %45 = arith.mulf %42, %44 : vector<1x128xf32>
    %46 = arith.mulf %10, %45 : vector<1x128xf32>
    %47 = vector.extract_strided_slice %40 {offsets = [0, 0], sizes = [1, 128], strides = [1, 1]} : vector<2x128xf32> to vector<1x128xf32>
    %48 = vector.extract_strided_slice %12 {offsets = [1, 0], sizes = [1, 1], strides = [1, 1]} : vector<4x1xf32> to vector<1x1xf32>
    %49 = vector.broadcast %48 : vector<1x1xf32> to vector<1x128xf32>
    %50 = arith.addf %47, %49 : vector<1x128xf32>
    %51 = arith.addf %46, %50 : vector<1x128xf32>
    %c0_25 = arith.constant 0 : index
    %c15 = arith.constant 15 : index
    %52 = vector.load %arg4[%c0_25, %c15] : memref<16x17xf32, #tpu.memory_space<vmem>>, vector<4x1xf32>
    %53 = vector.extract_strided_slice %52 {offsets = [2, 0], sizes = [1, 1], strides = [1, 1]} : vector<4x1xf32> to vector<1x1xf32>
    %54 = vector.broadcast %53 : vector<1x1xf32> to vector<1x128xf32>
    %55 = arith.mulf %51, %54 : vector<1x128xf32>
    %56 = vector.extract_strided_slice %52 {offsets = [0, 0], sizes = [1, 1], strides = [1, 1]} : vector<4x1xf32> to vector<1x1xf32>
    %57 = vector.broadcast %56 : vector<1x1xf32> to vector<1x128xf32>
    %58 = arith.addf %55, %57 : vector<1x128xf32>
    %c0_26 = arith.constant 0 : index
    %c11 = arith.constant 11 : index
    %59 = vector.load %arg4[%c0_26, %c11] : memref<16x17xf32, #tpu.memory_space<vmem>>, vector<16x1xf32>
    %60 = vector.broadcast %58 : vector<1x128xf32> to vector<16x128xf32>
    %61 = vector.broadcast %59 : vector<16x1xf32> to vector<16x128xf32>
    %62 = arith.mulf %60, %61 : vector<16x128xf32>
    %63 = vector.extract_strided_slice %9 {offsets = [32, 0], sizes = [16, 128], strides = [1, 1]} : vector<64x128xf32> to vector<16x128xf32>
    %c0_27 = arith.constant 0 : index
    %c3_28 = arith.constant 3 : index
    %64 = vector.load %arg4[%c0_27, %c3_28] : memref<16x17xf32, #tpu.memory_space<vmem>>, vector<16x1xf32>
    %65 = vector.broadcast %64 : vector<16x1xf32> to vector<16x128xf32>
    %66 = arith.addf %63, %65 : vector<16x128xf32>
    %67 = arith.addf %62, %66 : vector<16x128xf32>
    %cst_29 = arith.constant 0.000000e+00 : f32
    %68 = vector.broadcast %cst_29 : f32 to vector<16x128xf32>
    %69 = arith.maximumf %67, %68 : vector<16x128xf32>
    %c2 = arith.constant 2 : index
    %c0_30 = arith.constant 0 : index
    %c0_31 = arith.constant 0 : index
    %70 = vector.load %arg5[%c2, %c0_30, %c0_31] : memref<4x16x16xf32, #tpu.memory_space<vmem>>, vector<1x16x16xf32>
    %71 = vector.shape_cast %70 : vector<1x16x16xf32> to vector<16x16xf32>
    %cst_32 = arith.constant dense<0.000000e+00> : vector<16x128xf32>
    %72 = tpu.matmul %71, %69, %cst_32 {dimension_numbers = #tpu.dot_dimension_numbers<[1], [0], [0], [1], [0, 0, 1, 1], [], []>} : vector<16x16xf32>, vector<16x128xf32>, vector<16x128xf32> -> vector<16x128xf32>
    %c0_33 = arith.constant 0 : index
    %c7 = arith.constant 7 : index
    %73 = vector.load %arg4[%c0_33, %c7] : memref<16x17xf32, #tpu.memory_space<vmem>>, vector<16x1xf32>
    %74 = vector.broadcast %73 : vector<16x1xf32> to vector<16x128xf32>
    %75 = arith.addf %72, %74 : vector<16x128xf32>
    %cst_34 = arith.constant 0.000000e+00 : f32
    %76 = vector.broadcast %cst_34 : f32 to vector<16x128xf32>
    %77 = arith.maximumf %75, %76 : vector<16x128xf32>
    %c2_35 = arith.constant 2 : index
    %c0_36 = arith.constant 0 : index
    %c0_37 = arith.constant 0 : index
    %78 = vector.load %arg6[%c2_35, %c0_36, %c0_37] : memref<4x2x16xf32, #tpu.memory_space<vmem>>, vector<1x2x16xf32>
    %79 = vector.shape_cast %78 : vector<1x2x16xf32> to vector<2x16xf32>
    %cst_38 = arith.constant dense<0.000000e+00> : vector<2x128xf32>
    %80 = tpu.matmul %79, %77, %cst_38 {dimension_numbers = #tpu.dot_dimension_numbers<[1], [0], [0], [1], [0, 0, 1, 1], [], []>} : vector<2x16xf32>, vector<16x128xf32>, vector<2x128xf32> -> vector<2x128xf32>
    %81 = vector.extract_strided_slice %80 {offsets = [1, 0], sizes = [1, 128], strides = [1, 1]} : vector<2x128xf32> to vector<1x128xf32>
    %82 = math.exp %81 : vector<1x128xf32>
    %83 = vector.extract_strided_slice %52 {offsets = [3, 0], sizes = [1, 1], strides = [1, 1]} : vector<4x1xf32> to vector<1x1xf32>
    %84 = vector.broadcast %83 : vector<1x1xf32> to vector<1x128xf32>
    %85 = arith.mulf %82, %84 : vector<1x128xf32>
    %86 = arith.mulf %18, %85 : vector<1x128xf32>
    %87 = vector.extract_strided_slice %80 {offsets = [0, 0], sizes = [1, 128], strides = [1, 1]} : vector<2x128xf32> to vector<1x128xf32>
    %88 = vector.extract_strided_slice %52 {offsets = [1, 0], sizes = [1, 1], strides = [1, 1]} : vector<4x1xf32> to vector<1x1xf32>
    %89 = vector.broadcast %88 : vector<1x1xf32> to vector<1x128xf32>
    %90 = arith.addf %87, %89 : vector<1x128xf32>
    %91 = arith.addf %86, %90 : vector<1x128xf32>
    %c0_39 = arith.constant 0 : index
    %c14 = arith.constant 14 : index
    %92 = vector.load %arg4[%c0_39, %c14] : memref<16x17xf32, #tpu.memory_space<vmem>>, vector<4x1xf32>
    %93 = vector.extract_strided_slice %92 {offsets = [2, 0], sizes = [1, 1], strides = [1, 1]} : vector<4x1xf32> to vector<1x1xf32>
    %94 = vector.broadcast %93 : vector<1x1xf32> to vector<1x128xf32>
    %95 = arith.mulf %91, %94 : vector<1x128xf32>
    %96 = vector.extract_strided_slice %92 {offsets = [0, 0], sizes = [1, 1], strides = [1, 1]} : vector<4x1xf32> to vector<1x1xf32>
    %97 = vector.broadcast %96 : vector<1x1xf32> to vector<1x128xf32>
    %98 = arith.addf %95, %97 : vector<1x128xf32>
    %c0_40 = arith.constant 0 : index
    %c10 = arith.constant 10 : index
    %99 = vector.load %arg4[%c0_40, %c10] : memref<16x17xf32, #tpu.memory_space<vmem>>, vector<16x1xf32>
    %100 = vector.broadcast %98 : vector<1x128xf32> to vector<16x128xf32>
    %101 = vector.broadcast %99 : vector<16x1xf32> to vector<16x128xf32>
    %102 = arith.mulf %100, %101 : vector<16x128xf32>
    %103 = vector.extract_strided_slice %9 {offsets = [16, 0], sizes = [16, 128], strides = [1, 1]} : vector<64x128xf32> to vector<16x128xf32>
    %c0_41 = arith.constant 0 : index
    %c2_42 = arith.constant 2 : index
    %104 = vector.load %arg4[%c0_41, %c2_42] : memref<16x17xf32, #tpu.memory_space<vmem>>, vector<16x1xf32>
    %105 = vector.broadcast %104 : vector<16x1xf32> to vector<16x128xf32>
    %106 = arith.addf %103, %105 : vector<16x128xf32>
    %107 = arith.addf %102, %106 : vector<16x128xf32>
    %cst_43 = arith.constant 0.000000e+00 : f32
    %108 = vector.broadcast %cst_43 : f32 to vector<16x128xf32>
    %109 = arith.maximumf %107, %108 : vector<16x128xf32>
    %c1 = arith.constant 1 : index
    %c0_44 = arith.constant 0 : index
    %c0_45 = arith.constant 0 : index
    %110 = vector.load %arg5[%c1, %c0_44, %c0_45] : memref<4x16x16xf32, #tpu.memory_space<vmem>>, vector<1x16x16xf32>
    %111 = vector.shape_cast %110 : vector<1x16x16xf32> to vector<16x16xf32>
    %cst_46 = arith.constant dense<0.000000e+00> : vector<16x128xf32>
    %112 = tpu.matmul %111, %109, %cst_46 {dimension_numbers = #tpu.dot_dimension_numbers<[1], [0], [0], [1], [0, 0, 1, 1], [], []>} : vector<16x16xf32>, vector<16x128xf32>, vector<16x128xf32> -> vector<16x128xf32>
    %c0_47 = arith.constant 0 : index
    %c6 = arith.constant 6 : index
    %113 = vector.load %arg4[%c0_47, %c6] : memref<16x17xf32, #tpu.memory_space<vmem>>, vector<16x1xf32>
    %114 = vector.broadcast %113 : vector<16x1xf32> to vector<16x128xf32>
    %115 = arith.addf %112, %114 : vector<16x128xf32>
    %cst_48 = arith.constant 0.000000e+00 : f32
    %116 = vector.broadcast %cst_48 : f32 to vector<16x128xf32>
    %117 = arith.maximumf %115, %116 : vector<16x128xf32>
    %c1_49 = arith.constant 1 : index
    %c0_50 = arith.constant 0 : index
    %c0_51 = arith.constant 0 : index
    %118 = vector.load %arg6[%c1_49, %c0_50, %c0_51] : memref<4x2x16xf32, #tpu.memory_space<vmem>>, vector<1x2x16xf32>
    %119 = vector.shape_cast %118 : vector<1x2x16xf32> to vector<2x16xf32>
    %cst_52 = arith.constant dense<0.000000e+00> : vector<2x128xf32>
    %120 = tpu.matmul %119, %117, %cst_52 {dimension_numbers = #tpu.dot_dimension_numbers<[1], [0], [0], [1], [0, 0, 1, 1], [], []>} : vector<2x16xf32>, vector<16x128xf32>, vector<2x128xf32> -> vector<2x128xf32>
    %121 = vector.extract_strided_slice %120 {offsets = [1, 0], sizes = [1, 128], strides = [1, 1]} : vector<2x128xf32> to vector<1x128xf32>
    %122 = math.exp %121 : vector<1x128xf32>
    %123 = vector.extract_strided_slice %92 {offsets = [3, 0], sizes = [1, 1], strides = [1, 1]} : vector<4x1xf32> to vector<1x1xf32>
    %124 = vector.broadcast %123 : vector<1x1xf32> to vector<1x128xf32>
    %125 = arith.mulf %122, %124 : vector<1x128xf32>
    %126 = arith.mulf %58, %125 : vector<1x128xf32>
    %127 = vector.extract_strided_slice %120 {offsets = [0, 0], sizes = [1, 128], strides = [1, 1]} : vector<2x128xf32> to vector<1x128xf32>
    %128 = vector.extract_strided_slice %92 {offsets = [1, 0], sizes = [1, 1], strides = [1, 1]} : vector<4x1xf32> to vector<1x1xf32>
    %129 = vector.broadcast %128 : vector<1x1xf32> to vector<1x128xf32>
    %130 = arith.addf %127, %129 : vector<1x128xf32>
    %131 = arith.addf %126, %130 : vector<1x128xf32>
    %c0_53 = arith.constant 0 : index
    %c13 = arith.constant 13 : index
    %132 = vector.load %arg4[%c0_53, %c13] : memref<16x17xf32, #tpu.memory_space<vmem>>, vector<4x1xf32>
    %133 = vector.extract_strided_slice %132 {offsets = [2, 0], sizes = [1, 1], strides = [1, 1]} : vector<4x1xf32> to vector<1x1xf32>
    %134 = vector.broadcast %133 : vector<1x1xf32> to vector<1x128xf32>
    %135 = arith.mulf %131, %134 : vector<1x128xf32>
    %136 = vector.extract_strided_slice %132 {offsets = [0, 0], sizes = [1, 1], strides = [1, 1]} : vector<4x1xf32> to vector<1x1xf32>
    %137 = vector.broadcast %136 : vector<1x1xf32> to vector<1x128xf32>
    %138 = arith.addf %135, %137 : vector<1x128xf32>
    %c0_54 = arith.constant 0 : index
    %c9 = arith.constant 9 : index
    %139 = vector.load %arg4[%c0_54, %c9] : memref<16x17xf32, #tpu.memory_space<vmem>>, vector<16x1xf32>
    %140 = vector.broadcast %138 : vector<1x128xf32> to vector<16x128xf32>
    %141 = vector.broadcast %139 : vector<16x1xf32> to vector<16x128xf32>
    %142 = arith.mulf %140, %141 : vector<16x128xf32>
    %143 = vector.extract_strided_slice %9 {offsets = [0, 0], sizes = [16, 128], strides = [1, 1]} : vector<64x128xf32> to vector<16x128xf32>
    %c0_55 = arith.constant 0 : index
    %c1_56 = arith.constant 1 : index
    %144 = vector.load %arg4[%c0_55, %c1_56] : memref<16x17xf32, #tpu.memory_space<vmem>>, vector<16x1xf32>
    %145 = vector.broadcast %144 : vector<16x1xf32> to vector<16x128xf32>
    %146 = arith.addf %143, %145 : vector<16x128xf32>
    %147 = arith.addf %142, %146 : vector<16x128xf32>
    %cst_57 = arith.constant 0.000000e+00 : f32
    %148 = vector.broadcast %cst_57 : f32 to vector<16x128xf32>
    %149 = arith.maximumf %147, %148 : vector<16x128xf32>
    %c0_58 = arith.constant 0 : index
    %c0_59 = arith.constant 0 : index
    %c0_60 = arith.constant 0 : index
    %150 = vector.load %arg5[%c0_58, %c0_59, %c0_60] : memref<4x16x16xf32, #tpu.memory_space<vmem>>, vector<1x16x16xf32>
    %151 = vector.shape_cast %150 : vector<1x16x16xf32> to vector<16x16xf32>
    %cst_61 = arith.constant dense<0.000000e+00> : vector<16x128xf32>
    %152 = tpu.matmul %151, %149, %cst_61 {dimension_numbers = #tpu.dot_dimension_numbers<[1], [0], [0], [1], [0, 0, 1, 1], [], []>} : vector<16x16xf32>, vector<16x128xf32>, vector<16x128xf32> -> vector<16x128xf32>
    %c0_62 = arith.constant 0 : index
    %c5 = arith.constant 5 : index
    %153 = vector.load %arg4[%c0_62, %c5] : memref<16x17xf32, #tpu.memory_space<vmem>>, vector<16x1xf32>
    %154 = vector.broadcast %153 : vector<16x1xf32> to vector<16x128xf32>
    %155 = arith.addf %152, %154 : vector<16x128xf32>
    %cst_63 = arith.constant 0.000000e+00 : f32
    %156 = vector.broadcast %cst_63 : f32 to vector<16x128xf32>
    %157 = arith.maximumf %155, %156 : vector<16x128xf32>
    %c0_64 = arith.constant 0 : index
    %c0_65 = arith.constant 0 : index
    %c0_66 = arith.constant 0 : index
    %158 = vector.load %arg6[%c0_64, %c0_65, %c0_66] : memref<4x2x16xf32, #tpu.memory_space<vmem>>, vector<1x2x16xf32>
    %159 = vector.shape_cast %158 : vector<1x2x16xf32> to vector<2x16xf32>
    %cst_67 = arith.constant dense<0.000000e+00> : vector<2x128xf32>
    %160 = tpu.matmul %159, %157, %cst_67 {dimension_numbers = #tpu.dot_dimension_numbers<[1], [0], [0], [1], [0, 0, 1, 1], [], []>} : vector<2x16xf32>, vector<16x128xf32>, vector<2x128xf32> -> vector<2x128xf32>
    %161 = vector.extract_strided_slice %160 {offsets = [1, 0], sizes = [1, 128], strides = [1, 1]} : vector<2x128xf32> to vector<1x128xf32>
    %162 = math.exp %161 : vector<1x128xf32>
    %163 = vector.extract_strided_slice %132 {offsets = [3, 0], sizes = [1, 1], strides = [1, 1]} : vector<4x1xf32> to vector<1x1xf32>
    %164 = vector.broadcast %163 : vector<1x1xf32> to vector<1x128xf32>
    %165 = arith.mulf %162, %164 : vector<1x128xf32>
    %166 = arith.mulf %98, %165 : vector<1x128xf32>
    %167 = vector.extract_strided_slice %160 {offsets = [0, 0], sizes = [1, 128], strides = [1, 1]} : vector<2x128xf32> to vector<1x128xf32>
    %168 = vector.extract_strided_slice %132 {offsets = [1, 0], sizes = [1, 1], strides = [1, 1]} : vector<4x1xf32> to vector<1x1xf32>
    %169 = vector.broadcast %168 : vector<1x1xf32> to vector<1x128xf32>
    %170 = arith.addf %167, %169 : vector<1x128xf32>
    %171 = arith.addf %166, %170 : vector<1x128xf32>
    %c18 = arith.constant 18 : index
    %c0_68 = arith.constant 0 : index
    %172 = vector.load %arg1[%c18, %c0_68] : memref<24x128xf32, #tpu.memory_space<vmem>>, vector<2x128xf32>
    %173 = tpu.concatenate %138, %171 in 0 : vector<1x128xf32>, vector<1x128xf32> -> vector<2x128xf32>
    %174 = arith.addf %173, %172 : vector<2x128xf32>
    %c0_69 = arith.constant 0 : index
    %c0_70 = arith.constant 0 : index
    %175 = vector.load %arg7[%c0_69, %c0_70] : memref<2x128xf32, #tpu.memory_space<vmem>>, vector<2x128xf32>
    tpu.vector_store %arg7[%c0_69, %c0_70], %174 {strides = array<i32>} : memref<2x128xf32, #tpu.memory_space<vmem>>, vector<2x128xf32>,
    return
  }
  func.func @transform_0(%arg0: i32) -> (i32, i32) {
    %c0_i32 = arith.constant 0 : i32
    %c0_i32_0 = arith.constant 0 : i32
    return %c0_i32, %arg0 : i32, i32
  }
  func.func @transform_1(%arg0: i32) -> (i32, i32) {
    %c0_i32 = arith.constant 0 : i32
    %c0_i32_0 = arith.constant 0 : i32
    %c0_i32_1 = arith.constant 0 : i32
    return %c0_i32, %c0_i32_0 : i32, i32
  }
  func.func @transform_2(%arg0: i32) -> (i32, i32) {
    %c0_i32 = arith.constant 0 : i32
    %c0_i32_0 = arith.constant 0 : i32
    %c0_i32_1 = arith.constant 0 : i32
    return %c0_i32, %c0_i32_0 : i32, i32
  }
  func.func @transform_3(%arg0: i32) -> (i32, i32) {
    %c0_i32 = arith.constant 0 : i32
    %c0_i32_0 = arith.constant 0 : i32
    %c0_i32_1 = arith.constant 0 : i32
    return %c0_i32, %c0_i32_0 : i32, i32
  }
  func.func @transform_4(%arg0: i32) -> (i32, i32, i32) {
    %c0_i32 = arith.constant 0 : i32
    %c0_i32_0 = arith.constant 0 : i32
    %c0_i32_1 = arith.constant 0 : i32
    %c0_i32_2 = arith.constant 0 : i32
    return %c0_i32, %c0_i32_0, %c0_i32_1 : i32, i32, i32
  }
  func.func @transform_5(%arg0: i32) -> (i32, i32, i32) {
    %c0_i32 = arith.constant 0 : i32
    %c0_i32_0 = arith.constant 0 : i32
    %c0_i32_1 = arith.constant 0 : i32
    %c0_i32_2 = arith.constant 0 : i32
    return %c0_i32, %c0_i32_0, %c0_i32_1 : i32, i32, i32
  }
  func.func @transform_6(%arg0: i32) -> (i32, i32) {
    %c0_i32 = arith.constant 0 : i32
    %c0_i32_0 = arith.constant 0 : i32
    return %c0_i32, %arg0 : i32, i32
  }
}

</mosaic_0001>

<bundles_post_ra>
// kernel: tpu_custom_call.1
= control target key start
LH: loop header
LB: loop body
LE: loop exit
PB: predicated region body
PF: predicated region fallthrough
CT: control target
= control target key end

     0   :  { %11 = vsyncpa [#allocation3], 0  ;;  %s1078_s0 = inlined_call_operand.hbm [shape: f32[24,128], index: 0, kind: input, shape index: {}]   ;;  %s1079_s1 = inlined_call_operand.vmem [shape: f32[16,16], index: 1, kind: input, shape index: {}]   ;;  %s1080_s2 = inlined_call_operand.vmem [shape: f32[64,16], index: 2, kind: input, shape index: {}]   ;;  %s1081_s3 = inlined_call_operand.hbm [shape: f32[16,17], index: 3, kind: input, shape index: {}]   ;;  %s1082_s4 = inlined_call_operand.vmem [shape: f32[4,16,16], index: 4, kind: input, shape index: {}]   ;;  %s1083_s5 = inlined_call_operand.hbm [shape: f32[4,2,16], index: 5, kind: input, shape index: {}]   ;;  %s1084_s6 = inlined_call_operand.hbm [shape: f32[2,128], index: 6, kind: output, shape index: {}]  }
   0x1   :  { %12 = vsyncpa [#allocation6], 0 }
   0x2   :  { %13 = vsyncpa [#allocation4], 0  ;;  %s35_s23 = sshll.u32 %s1081_s3, 4  ;;  %s857_s24 = smov [#allocation5]   ;;  %s36_s23 = int_to_ptr.hbm [resolvable:$true] %s35_s23 }
   0x3   :  { %s37_s25 = sshll.u32 %s857_s24, 4  ;;  %s18_s28 = sshll.u32 %s1078_s0, 4  ;;  %s38_s25 = int_to_ptr.vmem [resolvable:$true] %s37_s25  ;;  %s19_s28 = int_to_ptr.hbm [resolvable:$true] %s18_s28 }
   0x4   :  { %s858_s29 = smov 128   ;;  %s859_s30 = smov 8  }
   0x5   :  { %43 = dma.hbm_to_vmem [thread:$0]  %s36_s23, 256, %s38_s25, [#allocation6], %s858_s29, %s858_s29, %s859_s30  }
   0x6   :  { %s860_s7 = smov [#allocation2]   ;;  %s50_s11 = sshll.u32 %s1083_s5, 4  ;;  %s51_s11 = int_to_ptr.hbm [resolvable:$true] %s50_s11 }
   0x7   :  { %s20_s8 = sshll.u32 %s860_s7, 4  ;;  %s861_s3 = smov [#allocation7]   ;;  %s21_s8 = int_to_ptr.vmem [resolvable:$true] %s20_s8 }
   0x8   :  { %26 = dma.hbm_to_vmem [thread:$0]  %s19_s28, 384, %s21_s8, [#allocation3], %s858_s29, %s858_s29, %s859_s30  }
   0x9   :  { %s52_s12 = sshll.u32 %s861_s3, 4  ;;  %s862_s13 = smov 32   ;;  %s53_s12 = int_to_ptr.vmem [resolvable:$true] %s52_s12 }
   0xa   :  { %s863_s14 = smov 2  }
   0xb   :  { %58 = dma.hbm_to_vmem [thread:$0]  %s51_s11, 128, %s53_s12, [#allocation6], %s862_s13, %s862_s13, %s863_s14  }
   0xc   :  { %851 = dma.done.wait [#allocation3], 384  }
   0xd   :  { %852 = vsyncadd [#allocation3], 4294966912 }
   0xe   :  { %853 = dma.done.wait [#allocation6], 384  }
   0xf   :  { %854 = vsyncadd [#allocation6], 4294966912  ;;  %v864_v0 = vmov 0   ;;  %v72_v1 = vld [vmem:[#allocation2 + $0x8] sm:$0xff]  ;;  %v71_v2 = vld [vmem:[#allocation2] sm:$0xff]  ;;  %vm87_vm0 = vcmask 130048  }
  0x10   :  { %719 = vset.pattern.permute.xlu0 %v864_v0  ;;  %108 = vmatpush.msra.mxu0 %v72_v1  ;;  %v73_v3 = vld [vmem:[%s1079_s1] sm:$0xff]  ;;  %v933_v5 = vld [vmem:[#allocation5] sm:$0xff]  ;;  %v74_v6 = vld [vmem:[%s1079_s1 + $0x8] sm:$0xff]  ;;  %v865_v7 = vmov 16   ;;  %v866_v9 = vmov 4   ;;  %v867_v12 = vmov 12  }
  0x11   :  { %v929_v4 = vld [vmem:[#allocation5 + $0x8] sm:$0xff]  ;;  %720 = vset.pattern.permute.xlu1 %v865_v7  ;;  %v940_v8 = vld [vmem:[#allocation5] sm:$0xf]  ;;  %722 = vset.pattern.permute.xlu2 %v866_v9  ;;  %v125_v19 = vld [vmem:[%s1080_s2 + $0x30] sm:$0xff]  ;;  %v868_v26 = vmov 8   ;;  %v869_v32 = vmov 15  }
  0x12   :  { %84 = vperm.xlu0 %719, %v929_v4   ;;  %109 = vmatpush.msra.mxu0 %v71_v2  ;;  %v126_v20 = vld [vmem:[%s1080_s2 + $0x38] sm:$0xff]  ;;  %v193_v23 = vld [vmem:[#allocation2 + $0x11] sm:$0x1]  ;;  %v870_v33 = vmov 11   ;;  %v871_v45 = vmov 7   ;;  %v872_v47 = vmov 10  }
  0x13   :  { %664 = vmatmul.msk.f32.vlgmr.msra.gmra.mxu0 %vm87_vm0, %v73_v3  ;;  %197 = vperm.xlu1 %720, %v940_v8   ;;  %v674_v44 = vld [vmem:[%s1082_s4 + $0x30] sm:$0xff]  ;;  %v675_v46 = vld [vmem:[%s1082_s4 + $0x38] sm:$0xff]  ;;  %v873_v48 = vmov 6   ;;  %v874_v49 = vmov 3   ;;  %v119_v50 = vld [vmem:[%s1080_s2] sm:$0xff]  ;;  %v875_v51 = vmov 9  }
  0x14   :  { %220 = vperm.xlu2 %722, %v929_v4   ;;  %v120_v52 = vld [vmem:[%s1080_s2 + $0x8] sm:$0xff]  ;;  %v876_v53 = vmov 1   ;;  %v121_v54 = vld [vmem:[%s1080_s2 + $0x10] sm:$0xff]  ;;  %v877_v55 = vmov 2   ;;  %v122_v56 = vld [vmem:[%s1080_s2 + $0x18] sm:$0xff]  ;;  %v878_v61 = vmov 13  }
  0x15   :  { %v123_v58 = vld [vmem:[%s1080_s2 + $0x20] sm:$0xff]  ;;  %v124_v1 = vld [vmem:[%s1080_s2 + $0x28] sm:$0xff]  ;;  %vm642_vm1 = vcmask 1040384   ;;  %s653_s22 = sshll.u32 %s1084_s6, 4  ;;  %s654_s22 = int_to_ptr.hbm [resolvable:$true] %s653_s22 }
  0x1a   :  { %79 = vperm.xlu0 %719, %v933_v5  }
  0x1b   :  { %665 = vmatmul.msk.f32.gmra.mxu0 %vm87_vm0, %v74_v6  ;;  %721 = vset.pattern.permute.xlu1 %v867_v12  ;;  %v272_v6 = vld [vmem:[#allocation7 + $0x6] sm:$0x3] }
  0x1c   :  { %210 = vperm.xlu1 %721, %v929_v4   ;;  %723 = vset.pattern.permute.xlu2 %v867_v12 }
  0x1d   :  { %206 = vperm.xlu2 %723, %v933_v5  }
  0x22   :  { %724 = vset.pattern.permute.xlu0 %v866_v9 }
  0x23   :  { %216 = vperm.xlu0 %724, %v933_v5  }
  0x24   :  { %725 = vset.pattern.permute.xlu1 %v868_v26 }
  0x25   :  { %726 = vset.pattern.permute.xlu2 %v868_v26  ;;  %237 = vperm.xlu1 %725, %v929_v4  }
  0x26   :  { %233 = vperm.xlu2 %726, %v933_v5  }
  0x2b   :  { %729 = vset.pattern.permute.xlu0 %v874_v49 }
  0x2c   :  { %331 = vperm.xlu0 %729, %v929_v4  }
  0x2d   :  { %727 = vset.pattern.permute.xlu1 %v869_v32 }
  0x2e   :  { %728 = vset.pattern.permute.xlu2 %v870_v33  ;;  %308 = vperm.xlu1 %727, %v940_v8  }
  0x2f   :  { %321 = vperm.xlu2 %728, %v929_v4  }
  0x36   :  { %730 = vset.pattern.permute.xlu1 %v870_v33 }
  0x37   :  { %317 = vperm.xlu1 %730, %v933_v5   ;;  %731 = vset.pattern.permute.xlu2 %v874_v49 }
  0x38   :  { %327 = vperm.xlu2 %731, %v933_v5  }
  0x3f   :  { %732 = vset.pattern.permute.xlu1 %v871_v45 }
  0x40   :  { %348 = vperm.xlu1 %732, %v929_v4   ;;  %733 = vset.pattern.permute.xlu2 %v871_v45 }
  0x41   :  { %344 = vperm.xlu2 %733, %v933_v5  }
  0x48   :  { %735 = vset.pattern.permute.xlu1 %v872_v47 }
  0x49   :  { %432 = vperm.xlu1 %735, %v929_v4   ;;  %736 = vset.pattern.permute.xlu2 %v877_v55  ;;  %v383_v55 = vld [vmem:[#allocation7 + $0x4] sm:$0x3] }
  0x4a   :  { %442 = vperm.xlu2 %736, %v929_v4  }
  0x51   :  { %428 = vperm.xlu1 %735, %v933_v5  }
  0x52   :  { %438 = vperm.xlu2 %736, %v933_v5  }
  0x59   :  { %738 = vset.pattern.permute.xlu1 %v873_v48 }
  0x5a   :  { %455 = vperm.xlu1 %738, %v933_v5   ;;  %739 = vset.pattern.permute.xlu2 %v878_v61 }
  0x5b   :  { %530 = vperm.xlu2 %739, %v940_v8  }
  0x62   :  { %740 = vset.pattern.permute.xlu1 %v875_v51 }
  0x63   :  { %543 = vperm.xlu1 %740, %v929_v4   ;;  %741 = vset.pattern.permute.xlu2 %v876_v53 }
  0x64   :  { %553 = vperm.xlu2 %741, %v929_v4  }
  0x6b   :  { %743 = vset.pattern.permute.xlu1 %v876_v53 }
  0x6c   :  { %549 = vperm.xlu1 %743, %v933_v5  }
  0x6e   :  { %v221_v24 = vpop.permute.xlu2 %220 }
  0x77   :  { %v207_v30 = vpop.permute.xlu2 %206 }
  0x80   :  { %v234_v59 = vpop.permute.xlu2 %233 }
  0x84   :  { %v85_v10 = vpop.permute.xlu0 %84 }
  0x85   :  { %v955_v21 = vpop.permute.xlu1 %197 }
  0x86   :  { %v199_v22 = vrot.slane %v955_v21, 2 }
  0x88   :  { %v201_v25 = vmul.f32 %v199_v22, %v193_v23 }
  0x89   :  { %v322_v23 = vpop.permute.xlu2 %321 }
  0x8a   :  { %v963_v27 = vadd.f32 %v201_v25, %v955_v21 }
  0x8c   :  { %v80_v13 = vpop.permute.xlu0 %79  ;;  %v204_v29 = vperm.slane %v963_v27, 0 }
  0x8e   :  { %v211_v34 = vpop.permute.xlu1 %210  ;;  %v213_v35 = vmul.f32 %v207_v30, %v204_v29 }
  0x8f   :  { %v214_v38 = vmul.f32 %v211_v34, %v204_v29 }
  0x90   :  { %v111_v11 = vpop.f32.mrf.mxu0 }
  0x91   :  { %v112_v15 = vadd.f32 %v111_v11, %v80_v13 }
  0x93   :  { %v117_v18 = vmax.f32 %v112_v15, 0.0 }
  0x95   :  { %v217_v31 = vpop.permute.xlu0 %216 }
  0x97   :  { %v238_v60 = vpop.permute.xlu1 %237 }
  0x98   :  { %v114_v14 = vpop.f32.mrf.mxu0 }
  0x99   :  { %v115_v16 = vadd.f32 %v114_v14, %v85_v10 }
  0x9b   :  { %v118_v17 = vmax.f32 %v115_v16, 0.0 }
  0x9d   :  { %165 = vmatpush.msra.mxu1 %v118_v17  ;;  %692 = vmatpush.msra.mxu2 %v118_v17  ;;  %v192_v17 = vld [vmem:[#allocation2 + $0x10] sm:$0x1] }
  0x9e   :  { %v332_v30 = vpop.permute.xlu0 %331 }
  0x9f   :  { %166 = vmatpush.msra.mxu1 %v117_v18  ;;  %693 = vmatpush.msra.mxu2 %v117_v18  ;;  %v303_v18 = vrot.slane %v955_v21, 1 }
  0xa0   :  { %672 = vmatmul.msk.f32.vlgmr.msra.gmra.mxu2 %vm87_vm0, %v125_v19  ;;  %666 = vmatmul.msk.f32.vlgmr.msra.gmra.mxu1 %vm87_vm0, %v119_v50 }
  0xa8   :  { %673 = vmatmul.msk.f32.gmra.mxu2 %vm87_vm0, %v126_v20  ;;  %667 = vmatmul.msk.f32.gmra.mxu1 %vm87_vm0, %v120_v52  ;;  %v309_v20 = vpop.permute.xlu1 %308 }
  0xb0   :  { %668 = vmatmul.msk.f32.gmra.mxu1 %vm87_vm0, %v121_v54 }
  0xb8   :  { %669 = vmatmul.msk.f32.gmra.mxu1 %vm87_vm0, %v122_v56 }
  0xc0   :  { %670 = vmatmul.msk.f32.gmra.mxu1 %vm87_vm0, %v123_v58  ;;  %v414_v58 = vrot.slane %v309_v20, 1 }
  0xc8   :  { %671 = vmatmul.msk.f32.gmra.mxu1 %vm87_vm0, %v124_v1 }
 0x11d   :  { %v1017_v7 = vpop.f32.mrf.mxu1 }
 0x123   :  { %v186_v28 = vpop.f32.mrf.mxu2 }
 0x124   :  { %v223_v36 = vadd.f32 %v217_v31, %v186_v28 }
 0x125   :  { %v1019_v9 = vpop.f32.mrf.mxu1 }
 0x126   :  { %v225_v41 = vadd.f32 %v223_v36, %v213_v35  ;;  %v318_v35 = vpop.permute.xlu1 %317 }
 0x128   :  { %v227_v43 = vmax.f32 %v225_v41, 0.0 }
 0x12b   :  { %v189_v37 = vpop.f32.mrf.mxu2 }
 0x12c   :  { %v224_v39 = vadd.f32 %v221_v24, %v189_v37  ;;  %v310_v24 = vrot.slane %v309_v20, 2 }
 0x12d   :  { %v1021_v10 = vpop.f32.mrf.mxu1 }
 0x12e   :  { %v226_v40 = vadd.f32 %v224_v39, %v214_v38 }
 0x130   :  { %v228_v42 = vmax.f32 %v226_v40, 0.0 }
 0x132   :  { %260 = vmatpush.msrb.mxu2 %v228_v42  ;;  %v679_v42 = vld [vmem:[%s1082_s4 + $0x20] sm:$0xff] }
 0x134   :  { %261 = vmatpush.msrb.mxu2 %v227_v43  ;;  %v680_v43 = vld [vmem:[%s1082_s4 + $0x28] sm:$0xff] }
 0x135   :  { %676 = vmatmul.msk.f32.vlgmr.msrb.gmra.mxu2 %vm87_vm0, %v674_v44  ;;  %v1023_v11 = vpop.f32.mrf.mxu1  ;;  %v879_v44 = vmov 14  }
 0x136   :  { %734 = vset.pattern.permute.xlu0 %v879_v44 }
 0x137   :  { %419 = vperm.xlu0 %734, %v940_v8  }
 0x13d   :  { %677 = vmatmul.msk.f32.gmra.mxu2 %vm87_vm0, %v675_v46  ;;  %v180_v15 = vpop.f32.mrf.mxu1  ;;  %v349_v46 = vpop.permute.xlu1 %348 }
 0x13f   :  { %737 = vset.pattern.permute.xlu0 %v873_v48 }
 0x140   :  { %459 = vperm.xlu0 %737, %v929_v4  }
 0x145   :  { %v183_v31 = vpop.f32.mrf.mxu1 }
 0x146   :  { %v335_v33 = vadd.f32 %v332_v30, %v183_v31 }
 0x148   :  { %742 = vset.pattern.permute.xlu0 %v875_v51 }
 0x149   :  { %539 = vperm.xlu0 %742, %v933_v5  }
 0x1a9   :  { %v420_v51 = vpop.permute.xlu0 %419 }
 0x1b8   :  { %v263_v57 = vpop.f32.mrf.mxu2 }
 0x1b9   :  { %v264_v63 = vadd.f32 %v263_v57, %v234_v59 }
 0x1bb   :  { %v269_v3 = vmax.f32 %v264_v63, 0.0 }
 0x1c0   :  { %v266_v62 = vpop.f32.mrf.mxu2 }
 0x1c1   :  { %v267_v0 = vadd.f32 %v266_v62, %v238_v60  ;;  %v433_v60 = vpop.permute.xlu1 %432 }
 0x1c3   :  { %v270_v2 = vmax.f32 %v267_v0, 0.0  ;;  %v421_v0 = vrot.slane %v420_v51, 2 }
 0x1c5   :  { %290 = vmatpush.msra.mxu3 %v270_v2 }
 0x1c7   :  { %291 = vmatpush.msra.mxu3 %v269_v3 }
 0x1c8   :  { %678 = vmatmul.msk.f32.vlgmr.msra.gmra.mxu3 %vm87_vm0, %v272_v6 }
 0x24b   :  { %v293_v12 = vpop.f32.mrf.mxu3 }
 0x24c   :  { %v296_v13 = vmul.f32 1.442695, %v293_v12  ;;  %v305_v26 = vadd.f32 %v303_v18, %v293_v12  ;;  %v429_v12 = vpop.permute.xlu1 %428 }
 0x24e   :  { %747 = vpow2.f32 %v296_v13 }
 0x254   :  { %v748_v14 = vpop.eup %747 }
 0x255   :  { %v298_v16 = vmul.f32 %v748_v14, %v199_v22  ;;  %v328_v22 = vpop.permute.xlu2 %327 }
 0x256   :  { %v334_v36 = vadd.f32 %v328_v22, %v180_v15 }
 0x257   :  { %v300_v19 = vrot.slane %v298_v16, 1 }
 0x259   :  { %v302_v25 = vmul.f32 %v300_v19, %v192_v17 }
 0x25b   :  { %v306_v28 = vadd.f32 %v305_v26, %v302_v25  ;;  %v456_v25 = vpop.permute.xlu1 %455 }
 0x25d   :  { %v312_v29 = vmul.f32 %v310_v24, %v306_v28  ;;  %v345_v47 = vpop.permute.xlu2 %344 }
 0x25f   :  { %v1028_v32 = vadd.f32 %v312_v29, %v309_v20 }
 0x261   :  { %v315_v34 = vperm.slane %v1028_v32, 0 }
 0x263   :  { %v325_v37 = vmul.f32 %v322_v23, %v315_v34  ;;  %v324_v21 = vmul.f32 %v318_v35, %v315_v34  ;;  %v684_v23 = vld [vmem:[%s1082_s4 + $0x10] sm:$0xff] }
 0x265   :  { %v337_v38 = vadd.f32 %v335_v33, %v325_v37  ;;  %v336_v39 = vadd.f32 %v334_v36, %v324_v21  ;;  %v443_v61 = vpop.permute.xlu2 %442  ;;  %v494_v33 = vld [vmem:[#allocation7 + $0x2] sm:$0x3]  ;;  %v544_v36 = vpop.permute.xlu1 %543  ;;  %v880_v21 = vmov 5  }
 0x266   :  { %v446_v15 = vadd.f32 %v443_v61, %v1023_v11  ;;  %745 = vset.pattern.permute.xlu1 %v880_v21  ;;  %744 = vset.pattern.permute.xlu2 %v880_v21 }
 0x267   :  { %v339_v40 = vmax.f32 %v337_v38, 0.0  ;;  %v338_v41 = vmax.f32 %v336_v39, 0.0  ;;  %565 = vperm.xlu1 %745, %v933_v5   ;;  %569 = vperm.xlu2 %744, %v929_v4   ;;  %v525_v39 = vrot.slane %v420_v51, 1 }
 0x268   :  { %746 = vset.pattern.permute.xlu0 %v880_v21 }
 0x269   :  { %371 = vmatpush.msrb.mxu3 %v339_v40 }
 0x26b   :  { %372 = vmatpush.msrb.mxu3 %v338_v41 }
 0x26c   :  { %681 = vmatmul.msk.f32.vlgmr.msrb.gmra.mxu3 %vm87_vm0, %v679_v42 }
 0x26d   :  { %v439_v13 = vpop.permute.xlu2 %438 }
 0x26e   :  { %v445_v14 = vadd.f32 %v439_v13, %v1021_v10  ;;  %v685_v10 = vld [vmem:[%s1082_s4 + $0x18] sm:$0xff] }
 0x274   :  { %682 = vmatmul.msk.f32.gmra.mxu3 %vm87_vm0, %v680_v43 }
 0x275   :  { %v531_v38 = vpop.permute.xlu2 %530 }
 0x276   :  { %v532_v41 = vrot.slane %v531_v38, 2  ;;  %v634_v13 = vrot.slane %v531_v38, 1 }
 0x2ef   :  { %v374_v45 = vpop.f32.mrf.mxu3 }
 0x2f0   :  { %v375_v50 = vadd.f32 %v374_v45, %v345_v47 }
 0x2f2   :  { %v380_v54 = vmax.f32 %v375_v50, 0.0 }
 0x2f7   :  { %v377_v49 = vpop.f32.mrf.mxu3 }
 0x2f8   :  { %v378_v52 = vadd.f32 %v377_v49, %v349_v46  ;;  %v550_v46 = vpop.permute.xlu1 %549  ;;  %v554_v49 = vpop.permute.xlu2 %553 }
 0x2f9   :  { %v557_v5 = vadd.f32 %v554_v49, %v1019_v9 }
 0x2fa   :  { %v381_v53 = vmax.f32 %v378_v52, 0.0 }
 0x2fc   :  { %401 = vmatpush.msrb.mxu0 %v381_v53  ;;  %v556_v53 = vadd.f32 %v550_v46, %v1017_v7  ;;  %v563_v7 = vld [vmem:[%s1082_s4 + $0x8] sm:$0xff] }
 0x2fe   :  { %402 = vmatpush.msrb.mxu0 %v380_v54 }
 0x2ff   :  { %683 = vmatmul.msk.f32.vlgmr.msrb.gmra.mxu0 %vm87_vm0, %v383_v55 }
 0x37c   :  { %v404_v8 = vpop.f32.mrf.mxu0 }
 0x37d   :  { %v407_v48 = vmul.f32 1.442695, %v404_v8  ;;  %v416_v63 = vadd.f32 %v414_v58, %v404_v8 }
 0x37f   :  { %749 = vpow2.f32 %v407_v48 }
 0x385   :  { %v750_v56 = vpop.eup %749 }
 0x386   :  { %v409_v57 = vmul.f32 %v750_v56, %v310_v24  ;;  %v460_v24 = vpop.permute.xlu0 %459 }
 0x388   :  { %v411_v59 = vrot.slane %v409_v57, 1  ;;  %v566_v57 = vpop.permute.xlu1 %565 }
 0x38a   :  { %v413_v62 = vmul.f32 %v411_v59, %v963_v27 }
 0x38c   :  { %v417_v1 = vadd.f32 %v416_v63, %v413_v62  ;;  %v603_v63 = vld [vmem:[#allocation7] sm:$0x3] }
 0x38e   :  { %v423_v2 = vmul.f32 %v421_v0, %v417_v1  ;;  %v540_v50 = vpop.permute.xlu0 %539 }
 0x390   :  { %v1046_v3 = vadd.f32 %v423_v2, %v420_v51  ;;  %v570_v51 = vpop.permute.xlu2 %569 }
 0x392   :  { %v426_v6 = vperm.slane %v1046_v3, 0 }
 0x394   :  { %v436_v16 = vmul.f32 %v433_v60, %v426_v6  ;;  %v435_v17 = vmul.f32 %v429_v12, %v426_v6 }
 0x396   :  { %v448_v18 = vadd.f32 %v446_v15, %v436_v16  ;;  %v447_v19 = vadd.f32 %v445_v14, %v435_v17 }
 0x398   :  { %v450_v20 = vmax.f32 %v448_v18, 0.0  ;;  %v449_v27 = vmax.f32 %v447_v19, 0.0  ;;  %v638_v18 = vld [vmem:[#allocation2 + $0x12] sm:$0x3] }
 0x39a   :  { %482 = vmatpush.msra.mxu2 %v450_v20 }
 0x39c   :  { %483 = vmatpush.msra.mxu2 %v449_v27 }
 0x39d   :  { %686 = vmatmul.msk.f32.vlgmr.msra.gmra.mxu2 %vm87_vm0, %v684_v23 }
 0x3a5   :  { %687 = vmatmul.msk.f32.gmra.mxu2 %vm87_vm0, %v685_v10 }
 0x420   :  { %v485_v11 = vpop.f32.mrf.mxu2 }
 0x421   :  { %v486_v28 = vadd.f32 %v485_v11, %v456_v25 }
 0x423   :  { %v491_v31 = vmax.f32 %v486_v28, 0.0 }
 0x428   :  { %v488_v26 = vpop.f32.mrf.mxu2 }
 0x429   :  { %v489_v29 = vadd.f32 %v488_v26, %v460_v24 }
 0x42b   :  { %v492_v30 = vmax.f32 %v489_v29, 0.0 }
 0x42d   :  { %512 = vmatpush.msra.mxu0 %v492_v30 }
 0x42f   :  { %513 = vmatpush.msra.mxu0 %v491_v31 }
 0x430   :  { %688 = vmatmul.msk.f32.vlgmr.msra.gmra.mxu0 %vm87_vm0, %v494_v33 }
 0x4ad   :  { %v515_v34 = vpop.f32.mrf.mxu0 }
 0x4ae   :  { %v518_v35 = vmul.f32 1.442695, %v515_v34  ;;  %v527_v43 = vadd.f32 %v525_v39, %v515_v34 }
 0x4b0   :  { %751 = vpow2.f32 %v518_v35 }
 0x4b6   :  { %v752_v22 = vpop.eup %751 }
 0x4b7   :  { %v520_v37 = vmul.f32 %v752_v22, %v421_v0 }
 0x4b9   :  { %v522_v40 = vrot.slane %v520_v37, 1 }
 0x4bb   :  { %v524_v42 = vmul.f32 %v522_v40, %v1028_v32  ;;  %v562_v32 = vld [vmem:[%s1082_s4] sm:$0xff]  ;;  %s881_s4 = smov [#allocation8]  }
 0x4bc   :  { %s651_s19 = sshll.u32 %s881_s4, 4  ;;  %s652_s19 = int_to_ptr.vmem [resolvable:$true] %s651_s19 }
 0x4bd   :  { %v528_v44 = vadd.f32 %v527_v43, %v524_v42 }
 0x4bf   :  { %v534_v45 = vmul.f32 %v532_v41, %v528_v44 }
 0x4c1   :  { %v536_v47 = vadd.f32 %v534_v45, %v531_v38 }
 0x4c3   :  { %v537_v52 = vperm.slane %v536_v47, 0 }
 0x4c5   :  { %v546_v54 = vmul.f32 %v540_v50, %v537_v52  ;;  %v547_v4 = vmul.f32 %v544_v36, %v537_v52 }
 0x4c7   :  { %v558_v55 = vadd.f32 %v556_v53, %v546_v54  ;;  %v559_v8 = vadd.f32 %v557_v5, %v547_v4 }
 0x4c9   :  { %v561_v48 = vmax.f32 %v559_v8, 0.0  ;;  %v560_v56 = vmax.f32 %v558_v55, 0.0 }
 0x4cb   :  { %592 = vmatpush.msra.mxu3 %v561_v48 }
 0x4cd   :  { %593 = vmatpush.msra.mxu3 %v560_v56 }
 0x4ce   :  { %689 = vmatmul.msk.f32.vlgmr.msra.gmra.mxu3 %vm87_vm0, %v562_v32 }
 0x4d6   :  { %690 = vmatmul.msk.f32.gmra.mxu3 %vm87_vm0, %v563_v7 }
 0x551   :  { %v595_v9 = vpop.f32.mrf.mxu3 }
 0x552   :  { %v596_v59 = vadd.f32 %v595_v9, %v566_v57 }
 0x554   :  { %v601_v62 = vmax.f32 %v596_v59, 0.0 }
 0x559   :  { %v598_v58 = vpop.f32.mrf.mxu3 }
 0x55a   :  { %v599_v60 = vadd.f32 %v598_v58, %v570_v51 }
 0x55c   :  { %v602_v61 = vmax.f32 %v599_v60, 0.0 }
 0x55e   :  { %621 = vmatpush.msrb.mxu0 %v602_v61 }
 0x560   :  { %622 = vmatpush.msrb.mxu0 %v601_v62 }
 0x561   :  { %691 = vmatmul.msk.f32.vlgmr.msrb.gmra.mxu0 %vm87_vm0, %v603_v63 }
 0x5de   :  { %v624_v0 = vpop.f32.mrf.mxu0 }
 0x5df   :  { %v627_v1 = vmul.f32 1.442695, %v624_v0  ;;  %v636_v15 = vadd.f32 %v634_v13, %v624_v0 }
 0x5e1   :  { %753 = vpow2.f32 %v627_v1 }
 0x5e7   :  { %v754_v2 = vpop.eup %753 }
 0x5e8   :  { %v629_v6 = vmul.f32 %v754_v2, %v532_v41 }
 0x5ea   :  { %v631_v12 = vrot.slane %v629_v6, 1 }
 0x5ec   :  { %v633_v14 = vmul.f32 %v631_v12, %v1046_v3 }
 0x5ee   :  { %v637_v16 = vadd.f32 %v636_v15, %v633_v14 }
 0x5f0   :  { %v640_v17 = vrot.slane %v637_v16, 7 }
 0x5f2   :  { %v643_v19 = vsel %vm642_vm1, %v536_v47, %v640_v17 }
 0x5f3   :  { %v644_v20 = vadd.f32 %v643_v19, %v638_v18 }
 0x5f5   :  { %645 = vst [vmem:[#allocation8] sm:$0x3] %v644_v20 }
 0x5f6   :  { %656 = dma.vmem_to_hbm [thread:$0]  %s652_s19, 32, %s654_s22, [#allocation4]  }
 0x5f7   :  { %855 = dma.done.wait [#allocation4], 32  }
 0x5f8   :  { %856 = vsyncadd [#allocation4], 4294967264 }
 0x5f9   :  { %661 = vsyncpa [#allocation3], 1 }
 0x5fa   :  { %662 = vsyncpa [#allocation6], 1 }
 0x5fb   :  { %663 = vsyncpa [#allocation4], 1 }

</bundles_post_ra>
